<compile_context>
chip_gen: v7x
topology: tpu7x:2x2x1
jax: 0.10.0
libtpu: 0.0.40
codegen_flags: <defaults>
</compile_context>

<pallas_src>
import jax
import jax.numpy as jnp
from jax import lax
from jax.experimental import pallas as pl
from jax.experimental.pallas import tpu as pltpu
import numpy as np


def pokernet_kernel(codes_ref, t1_ref, b1_ref, w2_ref, b2_ref, w3_ref, b3_ref,
                    o_ref):
    """One grid step processes b_tile hands in feature-major layout.

    codes_ref : (2L, BT) int32  card class codes (nums offset by +4)
    t1_ref    : (H, 17)  f32    fused (embed -> mix -> sum -> dec[0]) table^T
    b1_ref    : (H, 1)   f32    fused bias  (L*mix_b @ W1^T + b1)
    w2_ref    : (H, H)   f32    dec[2] weight (PyTorch (out,in) == W @ h layout)
    b2_ref    : (H, 1)   f32
    w3_ref    : (O, H)   f32    dec[4] weight
    b3_ref    : (O, 1)   f32
    o_ref     : (O, BT)  f32    lane-dense, unpadded output slab
    """
    codes = codes_ref[...]                        # (2L, BT)
    n_cards, bt = codes.shape
    n_classes = t1_ref.shape[1]                   # 4 + 13 = 17

    # Per-hand class counts (17, BT).  Unrolled over the 2L static card slots:
    # each step is one sublane-broadcast int compare + int32 add on a 17-sublane
    # tile.  Accumulate in int32; cast to f32 once.
    class_iota = lax.broadcasted_iota(jnp.int32, (n_classes, bt), 0)
    counts = jnp.zeros((n_classes, bt), jnp.int32)
    for c in range(n_cards):
        counts = counts + (codes[c:c + 1, :] == class_iota)
    counts_f = counts.astype(jnp.float32)

    # Fused embedding + mix + sum-over-cards + dec[0] (one MXU matmul) -> ReLU.
    h = jnp.maximum(
        jnp.dot(t1_ref[...], counts_f, preferred_element_type=jnp.float32)
        + b1_ref[...], 0.0)                                              # (H, BT)
    # dec[2] -> ReLU
    h = jnp.maximum(
        jnp.dot(w2_ref[...], h, preferred_element_type=jnp.float32)
        + b2_ref[...], 0.0)                                              # (H, BT)
    # dec[4]
    out = (jnp.dot(w3_ref[...], h, preferred_element_type=jnp.float32)
           + b3_ref[...])                                                # (O, BT)

    o_ref[...] = out.astype(o_ref.dtype)


def pokernet_forward(suits, nums, params, embed_dim, hid_dim, out_dim,
                     b_tile=2048):
    B, L = suits.shape
    E, H, O = embed_dim, hid_dim, out_dim
    LANE = 128

    def round_up(x, m):
        return ((x + m - 1) // m) * m

    # ---- algebraic folds (tiny, host-side) --------------------------------
    # sum_l mix(cat(suit_l, num_l)) = counts_suit @ (suit_enc @ Ws^T)
    #                               + counts_num  @ (num_enc  @ Wn^T) + L*mix_b
    ts = params["suit_enc"] @ params["mix_w"][:, :E].T           # (4,  H)
    tn = params["num_enc"] @ params["mix_w"][:, E:].T            # (13, H)
    table = jnp.concatenate([ts, tn], axis=0)                    # (17, H)
    # Fold dec[0] in as well (no ReLU between mix-sum and dec[0]):
    t1 = (params["dec0_w"] @ table.T).astype(jnp.float32)        # (H, 17) == (table @ W1^T)^T
    b1 = ((L * params["mix_b"]) @ params["dec0_w"].T
          + params["dec0_b"]).reshape(H, 1).astype(jnp.float32)

    # Remaining dec layers: PyTorch Linear weights are (out, in), which is
    # exactly the layout needed for the feature-major (W @ h) kernel.
    w2 = params["dec1_w"].astype(jnp.float32)                    # (H, H)
    b2 = params["dec1_b"].reshape(H, 1).astype(jnp.float32)
    w3 = params["dec2_w"].astype(jnp.float32)                    # (O, H)
    b3 = params["dec2_b"].reshape(O, 1).astype(jnp.float32)

    # ---- pack card indices feature-major: (2L, B), nums offset by +4 ------
    codes = jnp.concatenate(
        [suits.astype(jnp.int32).T, nums.astype(jnp.int32).T + 4], axis=0)

    # ---- batch tiling (batch sits on the lane axis) ------------------------
    b_tile = max(LANE, min(round_up(b_tile, LANE), round_up(B, LANE)))
    b_pad = round_up(B, b_tile)
    # v7x has 2 TensorCores: keep >= 2 grid steps on the "parallel" batch axis
    # whenever the batch is big enough so both cores get work (harmless on
    # single-TC v5e/v6e).
    while b_pad // b_tile < 2 and b_tile > LANE:
        b_tile = round_up(b_tile // 2, LANE)
        b_pad = round_up(B, b_tile)
    if b_pad != B:
        codes = jnp.concatenate(
            [codes, jnp.zeros((2 * L, b_pad - B), jnp.int32)], axis=1)

    n_classes = 17

    def resident(shape):
        # Tiny weight/bias tiles (< 8 KB total after the dec[0] fold): full
        # array, same block every grid step (Pallas skips the re-fetch).
        return pl.BlockSpec(shape, lambda b: (0,) * len(shape))

    out_t = pl.pallas_call(
        pokernet_kernel,
        out_shape=jax.ShapeDtypeStruct((O, b_pad), jnp.float32),
        grid=(b_pad // b_tile,),
        in_specs=[
            pl.BlockSpec((2 * L, b_tile), lambda b: (0, b)),   # packed card codes
            resident((H, n_classes)),                          # fused table (dec[0] folded)
            resident((H, 1)),                                  # fused bias
            resident((H, H)), resident((H, 1)),                # dec[2]
            resident((O, H)), resident((O, 1)),                # dec[4]
        ],
        out_specs=pl.BlockSpec((O, b_tile), lambda b: (0, b)),
        compiler_params=pltpu.CompilerParams(
            dimension_semantics=("parallel",)),
    )(codes, t1, b1, w2, b2, w3, b3)

    # (O, b_pad) -> (B, O); no padded lanes to strip, just the batch remainder.
    return out_t.T[:B]


def pokernet_reference(suits, nums, params):
    # Pure-JAX replica of the PyTorch forward (for validation).
    s = params["suit_enc"][suits]                                   # (B, L, E)
    n = params["num_enc"][nums]                                     # (B, L, E)
    x = jnp.concatenate([s, n], axis=2)                             # (B, L, 2E)
    x = x @ params["mix_w"].T + params["mix_b"]                     # (B, L, H)
    x = x.sum(axis=1)                                               # (B, H)
    x = jnp.maximum(x @ params["dec0_w"].T + params["dec0_b"], 0.0)
    x = jnp.maximum(x @ params["dec1_w"].T + params["dec1_b"], 0.0)
    x = x @ params["dec2_w"].T + params["dec2_b"]                   # (B, O)
    return x


def init_params(key, embed_dim, hid_dim, out_dim):
    E, H, O = embed_dim, hid_dim, out_dim
    ks = jax.random.split(key, 10)
    scale = 0.1
    # Shapes follow the PyTorch module's __init__ (Linear weights are (out, in)).
    return {
        "suit_enc": jax.random.normal(ks[0], (4, E), jnp.float32) * scale,
        "num_enc":  jax.random.normal(ks[1], (13, E), jnp.float32) * scale,
        "mix_w":    jax.random.normal(ks[2], (H, 2 * E), jnp.float32) * scale,
        "mix_b":    jax.random.normal(ks[3], (H,), jnp.float32) * scale,
        "dec0_w":   jax.random.normal(ks[4], (H, H), jnp.float32) * scale,
        "dec0_b":   jax.random.normal(ks[5], (H,), jnp.float32) * scale,
        "dec1_w":   jax.random.normal(ks[6], (H, H), jnp.float32) * scale,
        "dec1_b":   jax.random.normal(ks[7], (H,), jnp.float32) * scale,
        "dec2_w":   jax.random.normal(ks[8], (O, H), jnp.float32) * scale,
        "dec2_b":   jax.random.normal(ks[9], (O,), jnp.float32) * scale,
        # note: self.enc parameters are unused by forward() and not created.
    }


if __name__ == "__main__":
    B, L = 256, 8               # 256 hands of 8 cards -> 2 parallel grid steps
    EMBED, HID, OUT = 16, 32, 8

    key = jax.random.PRNGKey(0)
    kp, ks, kn = jax.random.split(key, 3)
    params = init_params(kp, EMBED, HID, OUT)

    suits = jax.random.randint(ks, (B, L), 0, 4, dtype=jnp.int32)
    nums = jax.random.randint(kn, (B, L), 0, 13, dtype=jnp.int32)

    out = pokernet_forward(suits, nums, params, EMBED, HID, OUT)
    out = jax.block_until_ready(out)

    ref = pokernet_reference(suits, nums, params)
    np.testing.assert_allclose(np.asarray(out), np.asarray(ref),
                               rtol=1e-4, atol=1e-5)

    print("KERNEL_OK")
</pallas_src>

<mosaic_0001>
module attributes {stable_mosaic.version = 11 : i64} {
  func.func @pokernet_kernel(%arg0: i32, %arg1: memref<16x128xi32, #tpu.memory_space<vmem>>, %arg2: memref<32x17xf32, #tpu.memory_space<vmem>>, %arg3: memref<32x1xf32, #tpu.memory_space<vmem>>, %arg4: memref<32x32xf32, #tpu.memory_space<vmem>>, %arg5: memref<32x1xf32, #tpu.memory_space<vmem>>, %arg6: memref<8x32xf32, #tpu.memory_space<vmem>>, %arg7: memref<8x1xf32, #tpu.memory_space<vmem>>, %arg8: memref<8x128xf32, #tpu.memory_space<vmem>>) attributes {dimension_semantics = [#tpu.dimension_semantics<parallel>], iteration_bounds = array<i64: 2>, scalar_prefetch = 0 : i64, scratch_operands = 0 : i64, tpu.core_type = #tpu.core_type<tc>, window_params = [{transform_indices = @transform_0, window_bounds = array<i64: 16, 128>}, {pipeline_mode = #tpu.pipeline_mode<synchronous>, transform_indices = @transform_1, window_bounds = array<i64: 32, 17>}, {pipeline_mode = #tpu.pipeline_mode<synchronous>, transform_indices = @transform_2, window_bounds = array<i64: 32, 1>}, {pipeline_mode = #tpu.pipeline_mode<synchronous>, transform_indices = @transform_3, window_bounds = array<i64: 32, 32>}, {pipeline_mode = #tpu.pipeline_mode<synchronous>, transform_indices = @transform_4, window_bounds = array<i64: 32, 1>}, {pipeline_mode = #tpu.pipeline_mode<synchronous>, transform_indices = @transform_5, window_bounds = array<i64: 8, 32>}, {pipeline_mode = #tpu.pipeline_mode<synchronous>, transform_indices = @transform_6, window_bounds = array<i64: 8, 1>}, {transform_indices = @transform_7, window_bounds = array<i64: 8, 128>}]} {
    %c0 = arith.constant 0 : index
    %c0_0 = arith.constant 0 : index
    %0 = vector.load %arg1[%c0, %c0_0] : memref<16x128xi32, #tpu.memory_space<vmem>>, vector<16x128xi32>
    %1 = tpu.iota {dimensions = array<i32: 0>} : vector<17x128xi32>
    %c0_i32 = arith.constant 0 : i32
    %2 = vector.broadcast %c0_i32 : i32 to vector<17x128xi32>
    %3 = vector.extract_strided_slice %0 {offsets = [0, 0], sizes = [1, 128], strides = [1, 1]} : vector<16x128xi32> to vector<1x128xi32>
    %4 = vector.broadcast %3 : vector<1x128xi32> to vector<17x128xi32>
    %5 = arith.cmpi eq, %4, %1 : vector<17x128xi32>
    %6 = arith.extui %5 : vector<17x128xi1> to vector<17x128xi32>
    %7 = arith.addi %2, %6 : vector<17x128xi32>
    %8 = vector.extract_strided_slice %0 {offsets = [1, 0], sizes = [1, 128], strides = [1, 1]} : vector<16x128xi32> to vector<1x128xi32>
    %9 = vector.broadcast %8 : vector<1x128xi32> to vector<17x128xi32>
    %10 = arith.cmpi eq, %9, %1 : vector<17x128xi32>
    %11 = arith.extui %10 : vector<17x128xi1> to vector<17x128xi32>
    %12 = arith.addi %7, %11 : vector<17x128xi32>
    %13 = vector.extract_strided_slice %0 {offsets = [2, 0], sizes = [1, 128], strides = [1, 1]} : vector<16x128xi32> to vector<1x128xi32>
    %14 = vector.broadcast %13 : vector<1x128xi32> to vector<17x128xi32>
    %15 = arith.cmpi eq, %14, %1 : vector<17x128xi32>
    %16 = arith.extui %15 : vector<17x128xi1> to vector<17x128xi32>
    %17 = arith.addi %12, %16 : vector<17x128xi32>
    %18 = vector.extract_strided_slice %0 {offsets = [3, 0], sizes = [1, 128], strides = [1, 1]} : vector<16x128xi32> to vector<1x128xi32>
    %19 = vector.broadcast %18 : vector<1x128xi32> to vector<17x128xi32>
    %20 = arith.cmpi eq, %19, %1 : vector<17x128xi32>
    %21 = arith.extui %20 : vector<17x128xi1> to vector<17x128xi32>
    %22 = arith.addi %17, %21 : vector<17x128xi32>
    %23 = vector.extract_strided_slice %0 {offsets = [4, 0], sizes = [1, 128], strides = [1, 1]} : vector<16x128xi32> to vector<1x128xi32>
    %24 = vector.broadcast %23 : vector<1x128xi32> to vector<17x128xi32>
    %25 = arith.cmpi eq, %24, %1 : vector<17x128xi32>
    %26 = arith.extui %25 : vector<17x128xi1> to vector<17x128xi32>
    %27 = arith.addi %22, %26 : vector<17x128xi32>
    %28 = vector.extract_strided_slice %0 {offsets = [5, 0], sizes = [1, 128], strides = [1, 1]} : vector<16x128xi32> to vector<1x128xi32>
    %29 = vector.broadcast %28 : vector<1x128xi32> to vector<17x128xi32>
    %30 = arith.cmpi eq, %29, %1 : vector<17x128xi32>
    %31 = arith.extui %30 : vector<17x128xi1> to vector<17x128xi32>
    %32 = arith.addi %27, %31 : vector<17x128xi32>
    %33 = vector.extract_strided_slice %0 {offsets = [6, 0], sizes = [1, 128], strides = [1, 1]} : vector<16x128xi32> to vector<1x128xi32>
    %34 = vector.broadcast %33 : vector<1x128xi32> to vector<17x128xi32>
    %35 = arith.cmpi eq, %34, %1 : vector<17x128xi32>
    %36 = arith.extui %35 : vector<17x128xi1> to vector<17x128xi32>
    %37 = arith.addi %32, %36 : vector<17x128xi32>
    %38 = vector.extract_strided_slice %0 {offsets = [7, 0], sizes = [1, 128], strides = [1, 1]} : vector<16x128xi32> to vector<1x128xi32>
    %39 = vector.broadcast %38 : vector<1x128xi32> to vector<17x128xi32>
    %40 = arith.cmpi eq, %39, %1 : vector<17x128xi32>
    %41 = arith.extui %40 : vector<17x128xi1> to vector<17x128xi32>
    %42 = arith.addi %37, %41 : vector<17x128xi32>
    %43 = vector.extract_strided_slice %0 {offsets = [8, 0], sizes = [1, 128], strides = [1, 1]} : vector<16x128xi32> to vector<1x128xi32>
    %44 = vector.broadcast %43 : vector<1x128xi32> to vector<17x128xi32>
    %45 = arith.cmpi eq, %44, %1 : vector<17x128xi32>
    %46 = arith.extui %45 : vector<17x128xi1> to vector<17x128xi32>
    %47 = arith.addi %42, %46 : vector<17x128xi32>
    %48 = vector.extract_strided_slice %0 {offsets = [9, 0], sizes = [1, 128], strides = [1, 1]} : vector<16x128xi32> to vector<1x128xi32>
    %49 = vector.broadcast %48 : vector<1x128xi32> to vector<17x128xi32>
    %50 = arith.cmpi eq, %49, %1 : vector<17x128xi32>
    %51 = arith.extui %50 : vector<17x128xi1> to vector<17x128xi32>
    %52 = arith.addi %47, %51 : vector<17x128xi32>
    %53 = vector.extract_strided_slice %0 {offsets = [10, 0], sizes = [1, 128], strides = [1, 1]} : vector<16x128xi32> to vector<1x128xi32>
    %54 = vector.broadcast %53 : vector<1x128xi32> to vector<17x128xi32>
    %55 = arith.cmpi eq, %54, %1 : vector<17x128xi32>
    %56 = arith.extui %55 : vector<17x128xi1> to vector<17x128xi32>
    %57 = arith.addi %52, %56 : vector<17x128xi32>
    %58 = vector.extract_strided_slice %0 {offsets = [11, 0], sizes = [1, 128], strides = [1, 1]} : vector<16x128xi32> to vector<1x128xi32>
    %59 = vector.broadcast %58 : vector<1x128xi32> to vector<17x128xi32>
    %60 = arith.cmpi eq, %59, %1 : vector<17x128xi32>
    %61 = arith.extui %60 : vector<17x128xi1> to vector<17x128xi32>
    %62 = arith.addi %57, %61 : vector<17x128xi32>
    %63 = vector.extract_strided_slice %0 {offsets = [12, 0], sizes = [1, 128], strides = [1, 1]} : vector<16x128xi32> to vector<1x128xi32>
    %64 = vector.broadcast %63 : vector<1x128xi32> to vector<17x128xi32>
    %65 = arith.cmpi eq, %64, %1 : vector<17x128xi32>
    %66 = arith.extui %65 : vector<17x128xi1> to vector<17x128xi32>
    %67 = arith.addi %62, %66 : vector<17x128xi32>
    %68 = vector.extract_strided_slice %0 {offsets = [13, 0], sizes = [1, 128], strides = [1, 1]} : vector<16x128xi32> to vector<1x128xi32>
    %69 = vector.broadcast %68 : vector<1x128xi32> to vector<17x128xi32>
    %70 = arith.cmpi eq, %69, %1 : vector<17x128xi32>
    %71 = arith.extui %70 : vector<17x128xi1> to vector<17x128xi32>
    %72 = arith.addi %67, %71 : vector<17x128xi32>
    %73 = vector.extract_strided_slice %0 {offsets = [14, 0], sizes = [1, 128], strides = [1, 1]} : vector<16x128xi32> to vector<1x128xi32>
    %74 = vector.broadcast %73 : vector<1x128xi32> to vector<17x128xi32>
    %75 = arith.cmpi eq, %74, %1 : vector<17x128xi32>
    %76 = arith.extui %75 : vector<17x128xi1> to vector<17x128xi32>
    %77 = arith.addi %72, %76 : vector<17x128xi32>
    %78 = vector.extract_strided_slice %0 {offsets = [15, 0], sizes = [1, 128], strides = [1, 1]} : vector<16x128xi32> to vector<1x128xi32>
    %79 = vector.broadcast %78 : vector<1x128xi32> to vector<17x128xi32>
    %80 = arith.cmpi eq, %79, %1 : vector<17x128xi32>
    %81 = arith.extui %80 : vector<17x128xi1> to vector<17x128xi32>
    %82 = arith.addi %77, %81 : vector<17x128xi32>
    %83 = arith.sitofp %82 : vector<17x128xi32> to vector<17x128xf32>
    %c0_1 = arith.constant 0 : index
    %c0_2 = arith.constant 0 : index
    %84 = vector.load %arg2[%c0_1, %c0_2] : memref<32x17xf32, #tpu.memory_space<vmem>>, vector<32x17xf32>
    %cst = arith.constant dense<0.000000e+00> : vector<32x128xf32>
    %85 = tpu.matmul %84, %83, %cst {dimension_numbers = #tpu.dot_dimension_numbers<[1], [0], [0], [1], [0, 0, 1, 1], [], []>} : vector<32x17xf32>, vector<17x128xf32>, vector<32x128xf32> -> vector<32x128xf32>
    %c0_3 = arith.constant 0 : index
    %c0_4 = arith.constant 0 : index
    %86 = vector.load %arg3[%c0_3, %c0_4] : memref<32x1xf32, #tpu.memory_space<vmem>>, vector<32x1xf32>
    %87 = vector.broadcast %86 : vector<32x1xf32> to vector<32x128xf32>
    %88 = arith.addf %85, %87 : vector<32x128xf32>
    %cst_5 = arith.constant 0.000000e+00 : f32
    %89 = vector.broadcast %cst_5 : f32 to vector<32x128xf32>
    %90 = arith.maximumf %88, %89 : vector<32x128xf32>
    %c0_6 = arith.constant 0 : index
    %c0_7 = arith.constant 0 : index
    %91 = vector.load %arg4[%c0_6, %c0_7] : memref<32x32xf32, #tpu.memory_space<vmem>>, vector<32x32xf32>
    %cst_8 = arith.constant dense<0.000000e+00> : vector<32x128xf32>
    %92 = tpu.matmul %91, %90, %cst_8 {dimension_numbers = #tpu.dot_dimension_numbers<[1], [0], [0], [1], [0, 0, 1, 1], [], []>} : vector<32x32xf32>, vector<32x128xf32>, vector<32x128xf32> -> vector<32x128xf32>
    %c0_9 = arith.constant 0 : index
    %c0_10 = arith.constant 0 : index
    %93 = vector.load %arg5[%c0_9, %c0_10] : memref<32x1xf32, #tpu.memory_space<vmem>>, vector<32x1xf32>
    %94 = vector.broadcast %93 : vector<32x1xf32> to vector<32x128xf32>
    %95 = arith.addf %92, %94 : vector<32x128xf32>
    %cst_11 = arith.constant 0.000000e+00 : f32
    %96 = vector.broadcast %cst_11 : f32 to vector<32x128xf32>
    %97 = arith.maximumf %95, %96 : vector<32x128xf32>
    %c0_12 = arith.constant 0 : index
    %c0_13 = arith.constant 0 : index
    %98 = vector.load %arg6[%c0_12, %c0_13] : memref<8x32xf32, #tpu.memory_space<vmem>>, vector<8x32xf32>
    %cst_14 = arith.constant dense<0.000000e+00> : vector<8x128xf32>
    %99 = tpu.matmul %98, %97, %cst_14 {dimension_numbers = #tpu.dot_dimension_numbers<[1], [0], [0], [1], [0, 0, 1, 1], [], []>} : vector<8x32xf32>, vector<32x128xf32>, vector<8x128xf32> -> vector<8x128xf32>
    %c0_15 = arith.constant 0 : index
    %c0_16 = arith.constant 0 : index
    %100 = vector.load %arg7[%c0_15, %c0_16] : memref<8x1xf32, #tpu.memory_space<vmem>>, vector<8x1xf32>
    %101 = vector.broadcast %100 : vector<8x1xf32> to vector<8x128xf32>
    %102 = arith.addf %99, %101 : vector<8x128xf32>
    %c0_17 = arith.constant 0 : index
    %c0_18 = arith.constant 0 : index
    %103 = vector.load %arg8[%c0_17, %c0_18] : memref<8x128xf32, #tpu.memory_space<vmem>>, vector<8x128xf32>
    tpu.vector_store %arg8[%c0_17, %c0_18], %102 {strides = array<i32>} : memref<8x128xf32, #tpu.memory_space<vmem>>, vector<8x128xf32>,
    return
  }
  func.func @transform_0(%arg0: i32) -> (i32, i32) {
    %c0_i32 = arith.constant 0 : i32
    %c0_i32_0 = arith.constant 0 : i32
    return %c0_i32, %arg0 : i32, i32
  }
  func.func @transform_1(%arg0: i32) -> (i32, i32) {
    %c0_i32 = arith.constant 0 : i32
    %c0_i32_0 = arith.constant 0 : i32
    %c0_i32_1 = arith.constant 0 : i32
    return %c0_i32, %c0_i32_0 : i32, i32
  }
  func.func @transform_2(%arg0: i32) -> (i32, i32) {
    %c0_i32 = arith.constant 0 : i32
    %c0_i32_0 = arith.constant 0 : i32
    %c0_i32_1 = arith.constant 0 : i32
    return %c0_i32, %c0_i32_0 : i32, i32
  }
  func.func @transform_3(%arg0: i32) -> (i32, i32) {
    %c0_i32 = arith.constant 0 : i32
    %c0_i32_0 = arith.constant 0 : i32
    %c0_i32_1 = arith.constant 0 : i32
    return %c0_i32, %c0_i32_0 : i32, i32
  }
  func.func @transform_4(%arg0: i32) -> (i32, i32) {
    %c0_i32 = arith.constant 0 : i32
    %c0_i32_0 = arith.constant 0 : i32
    %c0_i32_1 = arith.constant 0 : i32
    return %c0_i32, %c0_i32_0 : i32, i32
  }
  func.func @transform_5(%arg0: i32) -> (i32, i32) {
    %c0_i32 = arith.constant 0 : i32
    %c0_i32_0 = arith.constant 0 : i32
    %c0_i32_1 = arith.constant 0 : i32
    return %c0_i32, %c0_i32_0 : i32, i32
  }
  func.func @transform_6(%arg0: i32) -> (i32, i32) {
    %c0_i32 = arith.constant 0 : i32
    %c0_i32_0 = arith.constant 0 : i32
    %c0_i32_1 = arith.constant 0 : i32
    return %c0_i32, %c0_i32_0 : i32, i32
  }
  func.func @transform_7(%arg0: i32) -> (i32, i32) {
    %c0_i32 = arith.constant 0 : i32
    %c0_i32_0 = arith.constant 0 : i32
    return %c0_i32, %arg0 : i32, i32
  }
}

</mosaic_0001>

<bundles_post_ra>
// kernel: tpu_custom_call.1
= control target key start
LH: loop header
LB: loop body
LE: loop exit
PB: predicated region body
PF: predicated region fallthrough
CT: control target
= control target key end

     0   :  { %12 = vsyncpa [#allocation4], 0  ;;  %s1539_s0 = inlined_call_operand.vmem [shape: s32[16,256], index: 0, kind: input, shape index: {}]   ;;  %s1540_s1 = inlined_call_operand.vmem [shape: f32[32,17], index: 1, kind: input, shape index: {}]   ;;  %s1541_s2 = inlined_call_operand.vmem [shape: f32[32,1], index: 2, kind: input, shape index: {}]   ;;  %s1542_s3 = inlined_call_operand.vmem [shape: f32[32,32], index: 3, kind: input, shape index: {}]   ;;  %s1543_s4 = inlined_call_operand.vmem [shape: f32[32,1], index: 4, kind: input, shape index: {}]   ;;  %s1544_s5 = inlined_call_operand.vmem [shape: f32[8,32], index: 5, kind: input, shape index: {}]   ;;  %s1545_s6 = inlined_call_operand.vmem [shape: f32[8,1], index: 6, kind: input, shape index: {}]   ;;  %s1546_s7 = inlined_call_operand.hbm [shape: f32[8,256], index: 7, kind: output, shape index: {}]  }
   0x1   :  { %14 = vsyncpa [#allocation4 + $0x1], 0  ;;  %s1204_s24 = smov 0   ;;  %s1206_s25 = smov 0  }
   0x2   :  { %s1208_s26 = smov 0   ;;  %s1210_s27 = smov 0  }
   0x3 LB: > { %s952_s28 = sadd.s32 4294967295, %s1157_s27   ;;  %s953_s29 = sadd.s32 4294967294, %s1157_s27   ;;  %s1157_s27 = sphi %s1210_s27, %s1552_s27   ;;  %s1153_s26 = sphi %s1208_s26, %s1551_s26   ;;  %s1149_s25 = sphi %s1206_s25, %s1550_s25   ;;  %s1145_s24 = sphi %s1204_s24, %s1549_s24  }
   0x4   : > { %s1227_s30 = sadd.s32 1, %s1157_s27   ;;  %s27_s8 = sadd.s32 1, %s1153_s26 }
   0x5   : > { %s24_s9 = ssub.s32 %s1157_s27, %s1227_s30  ;;  %p34_p0 = scmp.ne.s32.totalorder %s1153_s26, %s1149_s25 }
   0x6   : > { %p25_p1 = scmp.eq.s32.totalorder %s24_s9, 0  ;;  %p35_p2 = scmp.eq.s32.totalorder %s1157_s27, 0 }
   0x7   : > { %p190_p3 = scmp.eq.s32.totalorder %s952_s28, 1  ;;  %p195_p4 = scmp.ne.s32.totalorder %s1149_s25, %s1145_s24 }
   0x8   : > { %s1240_s10 = scalar_select %p25_p1, %s1153_s26, %s27_s8  }
   0x9   : > { %p36_p5 = por %p35_p2, %p34_p0  ;;  %p1242_p6 = por %p190_p3, %p34_p0 }
   0xa   : > { %p196_p7 = scmp.eq.s32.totalorder %s953_s29, 1  ;;  %p955_p9 = scmp.ge.s32.totalorder %s1157_s27, 2 }
   0xc   : > { %p1246_p8 = por %p196_p7, %p195_p4  ;;  %230 = sbr.rel (%p955_p9) target bundleno = 26 (0x1a), region = 40 }
  0x13   : > { %233 = sbr.rel (!%p36_p5) target bundleno = 26 (0x1a), region = 44  ;;  %s235_s13 = sand.u32 (%p36_p5), 1, %s1153_s26  }
  0x14   : > { %s957_s14 = sshll.u32 (%p36_p5), %s1157_s27, 3  ;;  %s956_s15 = sshll.u32 (%p36_p5), %s235_s13, 4 }
  0x15   : > { %s239_s18 = scalar_lea.vmem (%p36_p5), %s1539_s0, %s957_s14  ;;  %s237_s19 = scalar_lea.vmem (%p36_p5), [#allocation2], %s956_s15 }
  0x16   : > { %v269_v0 = vld [vmem:[%s239_s18] sm:$0xff] (%p36_p5)  ;;  %v271_v1 = vld [vmem:[%s239_s18 + $0x10] sm:$0xff] (%p36_p5) }
  0x17   : > { %270 = vst [vmem:[%s237_s19] sm:$0xff] (%p36_p5), %v269_v0  ;;  %272 = vst [vmem:[%s237_s19 + $0x8] sm:$0xff] (%p36_p5), %v271_v1 }
  0x1a PF: > { %p958_p10 = scmp.ge.s32.totalorder %s1157_s27, 1  ;;  %p277_p11 = scmp.lt.s32.totalorder %s1157_s27, 3 }
  0x1c   : > { %p278_p12 = pnand %p958_p10, %p277_p11 }
  0x1d   : > { %s1261_s20 = sand.u32 (!%p278_p12), 1, %s1149_s25   ;;  %v317_v2 = vlaneseq (!%p278_p12)  ;;  %v529_v3 = vld [vmem:[%s1540_s1] sm:$0xff] (!%p278_p12)  ;;  %vm557_vm0 = vcmask (!%p278_p12), 138240   ;;  %v1159_v4 = vmov (!%p278_p12), 0   ;;  %v535_v7 = vld [vmem:[%s1541_s2 + $0x10] sm:$0xff] (!%p278_p12)  ;;  %v534_v9 = vld [vmem:[%s1541_s2 + $0x8] sm:$0xff] (!%p278_p12) }
  0x1e   : > { %281 = sbr.rel (%p278_p12) target bundleno = 770 (0x302), region = 82  ;;  %s959_s23 = sshll.u32 (!%p278_p12), %s1261_s20, 4  ;;  %1001 = vmatprep.mubr.msk.f32.mxu0 (!%p278_p12), %vm557_vm0, %v529_v3  ;;  %1093 = vset.pattern.permute.xlu0 (!%p278_p12), %v1159_v4  ;;  %v533_v5 = vld [vmem:[%s1541_s2] sm:$0xff] (!%p278_p12)  ;;  %v536_v14 = vld [vmem:[%s1541_s2 + $0x18] sm:$0xff] (!%p278_p12)  ;;  %v668_v28 = vld [vmem:[%s1543_s4 + $0x8] sm:$0xff] (!%p278_p12) }
  0x1f   : > { %v1272_v6 = vshrl.u32 (!%p278_p12), %v317_v2, 7  ;;  %539 = vperm.xlu0 (!%p278_p12), %1093, %v533_v5   ;;  %1094 = vset.pattern.permute.xlu1 (!%p278_p12), %v1159_v4  ;;  %s1278_s14 = scalar_lea.vmem (!%p278_p12), [#allocation2], %s959_s23  ;;  %v667_v27 = vld [vmem:[%s1543_s4] sm:$0xff] (!%p278_p12)  ;;  %v669_v37 = vld [vmem:[%s1543_s4 + $0x10] sm:$0xff] (!%p278_p12)  ;;  %v670_v41 = vld [vmem:[%s1543_s4 + $0x18] sm:$0xff] (!%p278_p12)  ;;  %s960_s19 = sshll.u32 (!%p278_p12), %s1261_s20, 3 }
  0x20   : > { %v1281_v8 = vld [vmem:[%s1278_s14] sm:$0xff] (!%p278_p12)  ;;  %549 = vperm.xlu1 (!%p278_p12), %1094, %v535_v7   ;;  %v316_v2 = vld [vmem:[%s1278_s14 + $0x8] sm:$0xff] (!%p278_p12)  ;;  %s972_s21 = sshll.u32 (!%p278_p12), %s952_s28, 7  ;;  %s314_s22 = scalar_lea.vmem (!%p278_p12), [#allocation3], %s960_s19 }
  0x21   : > { %v1287_v10 = vadd.s32 (!%p278_p12), 8, %v1272_v6  ;;  %v1290_v11 = vadd.s32 (!%p278_p12), 16, %v1272_v6  ;;  %v323_v12 = vsub.s32 (!%p278_p12), 0, %v1272_v6  ;;  %v333_v13 = vsub.s32 (!%p278_p12), 1, %v1272_v6  ;;  %v794_v50 = vld [vmem:[%s1545_s6] sm:$0xff] (!%p278_p12)  ;;  %s888_s23 = sshll.u32 (!%p278_p12), %s314_s22, 4  ;;  %s1495_s9 = scalar_lea.hbm (!%p278_p12), %s1546_s7, %s972_s21  ;;  %s1497_s23 = int_to_ptr.vmem [resolvable:$true] %s888_s23 }
  0x22   : > { %v346_v15 = vsub.s32 (!%p278_p12), 2, %v1272_v6  ;;  %v359_v16 = vsub.s32 (!%p278_p12), 3, %v1272_v6  ;;  %v372_v17 = vsub.s32 (!%p278_p12), 4, %v1272_v6  ;;  %v385_v18 = vsub.s32 (!%p278_p12), 5, %v1272_v6  ;;  %s875_s13 = scalar_lea.sflag (!%p278_p12), [#allocation4], %s1261_s20  ;;  %s1095_s15 = scalar_lea.vmem (!%p278_p12), %s1497_s23, 128 }
  0x23   : > { %v324_v19 = vrot.slane (!%p278_p12), %v1281_v8, %v323_v12  ;;  %v334_v20 = vrot.slane (!%p278_p12), %v1281_v8, %v333_v13  ;;  %v398_v21 = vsub.s32 (!%p278_p12), 6, %v1272_v6  ;;  %v411_v22 = vsub.s32 (!%p278_p12), 7, %v1272_v6  ;;  %544 = vperm.xlu0 (!%p278_p12), %1093, %v534_v9   ;;  %p1096_p13 = scmp.ne.s32.totalorder (!%p278_p12), %s1497_s23, %s1095_s15  ;;  %s1163_s28 = smov (!%p278_p12), [#allocation3]  }
  0x24   : > { %v347_v23 = vrot.slane (!%p278_p12), %v1281_v8, %v346_v15  ;;  %v360_v24 = vrot.slane (!%p278_p12), %v1281_v8, %v359_v16  ;;  %v373_v25 = vrot.slane (!%p278_p12), %v1281_v8, %v372_v17  ;;  %v386_v26 = vrot.slane (!%p278_p12), %v1281_v8, %v385_v18  ;;  %554 = vperm.xlu1 (!%p278_p12), %1094, %v536_v14   ;;  %s1099_s16 = sshll.u32 (!%p278_p12), %s1163_s28, 4  ;;  %s1100_s16 = int_to_ptr.vmem [resolvable:$false] %s1099_s16 }
  0x25   : > { %vm325_vm1 = vcmp.eq.s32.totalorder %v324_v19, %v1272_v6  ;;  %vm326_vm2 = vcmp.eq.s32.totalorder %v324_v19, %v1287_v10  ;;  %vm327_vm3 = vcmp.eq.s32.totalorder %v324_v19, %v1290_v11  ;;  %vm335_vm4 = vcmp.eq.s32.totalorder %v334_v20, %v1272_v6  ;;  %p1097_p0 = pnand %p1096_p13, %p1242_p6  ;;  %s1101_s14 = scalar_lea.vmem %s1100_s16, 256 }
  0x26   : > { %v328_v29 = vsel %vm325_vm1, 1, %v1159_v4  ;;  %v329_v30 = vsel %vm326_vm2, 1, %v1159_v4  ;;  %v330_v31 = vsel %vm327_vm3, 1, %v1159_v4  ;;  %vm336_vm5 = vcmp.eq.s32.totalorder %v334_v20, %v1287_v10  ;;  %p1102_p2 = scmp.lt.s32.totalorder %s1497_s23, %s1100_s16  ;;  %p1103_p3 = scmp.lt.s32.totalorder %s1101_s14, %s1095_s15 }
  0x27   : > { %vm337_vm6 = vcmp.eq.s32.totalorder %v334_v20, %v1290_v11  ;;  %v338_v32 = vsel %vm335_vm4, 1, %v1159_v4  ;;  %v339_v33 = vsel %vm336_vm5, 1, %v1159_v4  ;;  %vm348_vm7 = vcmp.eq.s32.totalorder %v347_v23, %v1272_v6  ;;  %673 = vperm.xlu0 %1093, %v667_v27   ;;  %p1098_p1 = pneg %p1097_p0 }
  0x28   : > { %v340_v34 = vsel %vm337_vm6, 1, %v1159_v4  ;;  %v341_v35 = vadd.s32 %v338_v32, %v328_v29  ;;  %v342_v36 = vadd.s32 %v339_v33, %v329_v30  ;;  %vm349_vm8 = vcmp.eq.s32.totalorder %v347_v23, %v1287_v10  ;;  %678 = vperm.xlu1 %1094, %v668_v28   ;;  %p1104_p4 = por %p1103_p3, %p1102_p2 }
  0x29   : > { %v343_v38 = vadd.s32 %v340_v34, %v330_v31  ;;  %vm350_vm9 = vcmp.eq.s32.totalorder %v347_v23, %v1290_v11  ;;  %v351_v39 = vsel %vm348_vm7, 1, %v1159_v4  ;;  %v352_v40 = vsel %vm349_vm8, 1, %v1159_v4 }
  0x2a   : > { %v353_v42 = vsel %vm350_vm9, 1, %v1159_v4  ;;  %v354_v43 = vadd.s32 %v351_v39, %v341_v35  ;;  %v355_v44 = vadd.s32 %v352_v40, %v342_v36  ;;  %vm361_vm10 = vcmp.eq.s32.totalorder %v360_v24, %v1272_v6  ;;  %p1105_p5 = pnand %p1104_p4, %p1098_p1 }
  0x2b   : > { %v356_v45 = vadd.s32 %v353_v42, %v343_v38  ;;  %vm362_vm11 = vcmp.eq.s32.totalorder %v360_v24, %v1287_v10  ;;  %vm363_vm12 = vcmp.eq.s32.totalorder %v360_v24, %v1290_v11  ;;  %v364_v46 = vsel %vm361_vm10, 1, %v1159_v4  ;;  %683 = vperm.xlu0 %1093, %v669_v37  }
  0x2c   : > { %v365_v47 = vsel %vm362_vm11, 1, %v1159_v4  ;;  %v366_v48 = vsel %vm363_vm12, 1, %v1159_v4  ;;  %v367_v49 = vadd.s32 %v364_v46, %v354_v43  ;;  %vm374_vm13 = vcmp.eq.s32.totalorder %v373_v25, %v1272_v6  ;;  %688 = vperm.xlu1 %1094, %v670_v41  }
  0x2d   : > { %v368_v51 = vadd.s32 %v365_v47, %v355_v44  ;;  %v369_v52 = vadd.s32 %v366_v48, %v356_v45  ;;  %vm375_vm14 = vcmp.eq.s32.totalorder %v373_v25, %v1287_v10  ;;  %vm376_vm15 = vcmp.eq.s32.totalorder %v373_v25, %v1290_v11 }
  0x2e   : > { %v377_v53 = vsel %vm374_vm13, 1, %v1159_v4  ;;  %v378_v54 = vsel %vm375_vm14, 1, %v1159_v4  ;;  %v379_v55 = vsel %vm376_vm15, 1, %v1159_v4  ;;  %vm387_vm1 = vcmp.eq.s32.totalorder %v386_v26, %v1272_v6 }
  0x2f   : > { %v380_v56 = vadd.s32 %v377_v53, %v367_v49  ;;  %v381_v57 = vadd.s32 %v378_v54, %v368_v51  ;;  %v382_v58 = vadd.s32 %v379_v55, %v369_v52  ;;  %vm388_vm2 = vcmp.eq.s32.totalorder %v386_v26, %v1287_v10  ;;  %797 = vperm.xlu0 %1093, %v794_v50  }
  0x30   : > { %vm389_vm3 = vcmp.eq.s32.totalorder %v386_v26, %v1290_v11  ;;  %v390_v59 = vsel %vm387_vm1, 1, %v1159_v4  ;;  %v391_v60 = vsel %vm388_vm2, 1, %v1159_v4  ;;  %v399_v61 = vrot.slane %v1281_v8, %v398_v21 }
  0x31   : > { %v392_v62 = vsel %vm389_vm3, 1, %v1159_v4  ;;  %v393_v63 = vadd.s32 %v390_v59, %v380_v56  ;;  %v394_v0 = vadd.s32 %v391_v60, %v381_v57  ;;  %v412_v1 = vrot.slane %v1281_v8, %v411_v22 }
  0x32   : > { %v395_v3 = vadd.s32 %v392_v62, %v382_v58  ;;  %vm400_vm4 = vcmp.eq.s32.totalorder %v399_v61, %v1272_v6  ;;  %vm401_vm5 = vcmp.eq.s32.totalorder %v399_v61, %v1287_v10  ;;  %vm402_vm6 = vcmp.eq.s32.totalorder %v399_v61, %v1290_v11 }
  0x33   : > { %v403_v5 = vsel %vm400_vm4, 1, %v1159_v4  ;;  %v404_v7 = vsel %vm401_vm5, 1, %v1159_v4  ;;  %v405_v9 = vsel %vm402_vm6, 1, %v1159_v4  ;;  %vm413_vm7 = vcmp.eq.s32.totalorder %v412_v1, %v1272_v6 }
  0x34   : > { %v406_v14 = vadd.s32 %v403_v5, %v393_v63  ;;  %v407_v19 = vadd.s32 %v404_v7, %v394_v0  ;;  %v408_v20 = vadd.s32 %v405_v9, %v395_v3  ;;  %vm414_vm8 = vcmp.eq.s32.totalorder %v412_v1, %v1287_v10 }
  0x35   : > { %vm415_vm9 = vcmp.eq.s32.totalorder %v412_v1, %v1290_v11  ;;  %v416_v8 = vsel %vm413_vm7, 1, %v1159_v4  ;;  %v417_v23 = vsel %vm414_vm8, 1, %v1159_v4  ;;  %v425_v24 = vrot.slane %v316_v2, %v323_v12 }
  0x36   : > { %v418_v25 = vsel %vm415_vm9, 1, %v1159_v4  ;;  %v419_v26 = vadd.s32 %v416_v8, %v406_v14  ;;  %v420_v27 = vadd.s32 %v417_v23, %v407_v19  ;;  %v438_v28 = vrot.slane %v316_v2, %v333_v13 }
  0x37   : > { %v421_v29 = vadd.s32 %v418_v25, %v408_v20  ;;  %vm426_vm10 = vcmp.eq.s32.totalorder %v425_v24, %v1272_v6  ;;  %vm427_vm11 = vcmp.eq.s32.totalorder %v425_v24, %v1287_v10  ;;  %v451_v30 = vrot.slane %v316_v2, %v346_v15 }
  0x38   : > { %v429_v31 = vsel %vm426_vm10, 1, %v1159_v4  ;;  %v430_v32 = vsel %vm427_vm11, 1, %v1159_v4  ;;  %vm439_vm12 = vcmp.eq.s32.totalorder %v438_v28, %v1272_v6  ;;  %vm440_vm13 = vcmp.eq.s32.totalorder %v438_v28, %v1287_v10 }
  0x39   : > { %v432_v12 = vadd.s32 %v429_v31, %v419_v26  ;;  %v433_v33 = vadd.s32 %v430_v32, %v420_v27  ;;  %v442_v13 = vsel %vm439_vm12, 1, %v1159_v4  ;;  %v443_v34 = vsel %vm440_vm13, 1, %v1159_v4  ;;  %v530_v26 = vld [vmem:[%s1540_s1 + $0x8] sm:$0xff]  ;;  %v531_v27 = vld [vmem:[%s1540_s1 + $0x10] sm:$0xff] }
  0x3a   : > { %vm452_vm14 = vcmp.eq.s32.totalorder %v451_v30, %v1272_v6  ;;  %vm453_vm15 = vcmp.eq.s32.totalorder %v451_v30, %v1287_v10  ;;  %v464_v15 = vrot.slane %v316_v2, %v359_v16  ;;  %v477_v35 = vrot.slane %v316_v2, %v372_v17 }
  0x3b   : > { %v445_v36 = vadd.s32 %v442_v13, %v432_v12  ;;  %v446_v37 = vadd.s32 %v443_v34, %v433_v33  ;;  %v455_v38 = vsel %vm452_vm14, 1, %v1159_v4  ;;  %v456_v39 = vsel %vm453_vm15, 1, %v1159_v4 }
  0x3c   : > { %vm465_vm1 = vcmp.eq.s32.totalorder %v464_v15, %v1272_v6  ;;  %vm466_vm2 = vcmp.eq.s32.totalorder %v464_v15, %v1287_v10  ;;  %vm478_vm3 = vcmp.eq.s32.totalorder %v477_v35, %v1272_v6  ;;  %vm479_vm4 = vcmp.eq.s32.totalorder %v477_v35, %v1287_v10 }
  0x3d   : > { %v458_v40 = vadd.s32 %v455_v38, %v445_v36  ;;  %v459_v41 = vadd.s32 %v456_v39, %v446_v37  ;;  %v468_v16 = vsel %vm465_vm1, 1, %v1159_v4  ;;  %v469_v17 = vsel %vm466_vm2, 1, %v1159_v4 }
  0x3e   : > { %v481_v42 = vsel %vm478_vm3, 1, %v1159_v4  ;;  %v482_v43 = vsel %vm479_vm4, 1, %v1159_v4  ;;  %v490_v44 = vrot.slane %v316_v2, %v385_v18  ;;  %v503_v45 = vrot.slane %v316_v2, %v398_v21 }
  0x3f   : > { %v471_v46 = vadd.s32 %v468_v16, %v458_v40  ;;  %v472_v47 = vadd.s32 %v469_v17, %v459_v41  ;;  %v516_v48 = vrot.slane %v316_v2, %v411_v22  ;;  %vm428_vm5 = vcmp.eq.s32.totalorder %v425_v24, %v1290_v11  ;;  %v664_v17 = vld [vmem:[%s1542_s3 + $0x8] sm:$0xff] }
  0x40   : > { %vm491_vm6 = vcmp.eq.s32.totalorder %v490_v44, %v1272_v6  ;;  %vm492_vm7 = vcmp.eq.s32.totalorder %v490_v44, %v1287_v10  ;;  %vm504_vm8 = vcmp.eq.s32.totalorder %v503_v45, %v1272_v6  ;;  %vm505_vm9 = vcmp.eq.s32.totalorder %v503_v45, %v1287_v10 }
  0x41   : > { %v484_v49 = vadd.s32 %v481_v42, %v471_v46  ;;  %v485_v18 = vadd.s32 %v482_v43, %v472_v47  ;;  %v494_v50 = vsel %vm491_vm6, 1, %v1159_v4  ;;  %v495_v21 = vsel %vm492_vm7, 1, %v1159_v4  ;;  %v665_v42 = vld [vmem:[%s1542_s3 + $0x10] sm:$0xff]  ;;  %v666_v43 = vld [vmem:[%s1542_s3 + $0x18] sm:$0xff] }
  0x42   : > { %v507_v51 = vsel %vm504_vm8, 1, %v1159_v4  ;;  %v508_v22 = vsel %vm505_vm9, 1, %v1159_v4  ;;  %vm517_vm10 = vcmp.eq.s32.totalorder %v516_v48, %v1272_v6  ;;  %vm518_vm11 = vcmp.eq.s32.totalorder %v516_v48, %v1287_v10 }
  0x43   : > { %v497_v52 = vadd.s32 %v494_v50, %v484_v49  ;;  %v498_v53 = vadd.s32 %v495_v21, %v485_v18  ;;  %v520_v54 = vsel %vm517_vm10, 1, %v1159_v4  ;;  %v521_v55 = vsel %vm518_vm11, 1, %v1159_v4 }
  0x44   : > { %v431_v56 = vsel %vm428_vm5, 1, %v1159_v4  ;;  %vm441_vm12 = vcmp.eq.s32.totalorder %v438_v28, %v1290_v11  ;;  %vm454_vm13 = vcmp.eq.s32.totalorder %v451_v30, %v1290_v11  ;;  %vm467_vm14 = vcmp.eq.s32.totalorder %v464_v15, %v1290_v11 }
  0x45   : > { %v510_v57 = vadd.s32 %v507_v51, %v497_v52  ;;  %v511_v6 = vadd.s32 %v508_v22, %v498_v53  ;;  %v434_v58 = vadd.s32 %v431_v56, %v421_v29  ;;  %v444_v10 = vsel %vm441_vm12, 1, %v1159_v4 }
  0x46   : > { %v457_v59 = vsel %vm454_vm13, 1, %v1159_v4  ;;  %vm480_vm15 = vcmp.eq.s32.totalorder %v477_v35, %v1290_v11  ;;  %v470_v63 = vsel %vm467_vm14, 1, %v1159_v4  ;;  %vm493_vm1 = vcmp.eq.s32.totalorder %v490_v44, %v1290_v11 }
  0x47   : > { %v523_v60 = vadd.s32 %v520_v54, %v510_v57  ;;  %v524_v61 = vadd.s32 %v521_v55, %v511_v6  ;;  %v447_v62 = vadd.s32 %v444_v10, %v434_v58  ;;  %v483_v3 = vsel %vm480_vm15, 1, %v1159_v4 }
  0x48   : > { %vm506_vm2 = vcmp.eq.s32.totalorder %v503_v45, %v1290_v11  ;;  %v496_v9 = vsel %vm493_vm1, 1, %v1159_v4  ;;  %vm519_vm3 = vcmp.eq.s32.totalorder %v516_v48, %v1290_v11  ;;  %vm570_vm4 = vcmask 1040384   ;;  %v663_v11 = vld [vmem:[%s1542_s3] sm:$0xff] }
  0x49   : > { %v526_v0 = vcvt.s32.f32 %v523_v60  ;;  %v527_v1 = vcvt.s32.f32 %v524_v61  ;;  %v460_v2 = vadd.s32 %v457_v59, %v447_v62  ;;  %v509_v19 = vsel %vm506_vm2, 1, %v1159_v4  ;;  %v793_v59 = vld [vmem:[%s1544_s5] sm:$0xff] }
  0x4a   : > { %v522_v8 = vsel %vm519_vm3, 1, %v1159_v4  ;;  %v532_v4 = vld [vmem:[%s1540_s1 + $0x18] sm:$0xff]  ;;  %vm691_vm5 = vcmask 261120   ;;  %v1160_v44 = vmov 0.0|0.0   ;;  %v1162_v45 = vmov 0.0  }
  0x4b   : > { %v1032_v5 = vpack.c.bf16 %v527_v1, %v526_v0  ;;  %v473_v7 = vadd.s32 %v470_v63, %v460_v2  ;;  %1015 = vmatprep.mubr.msk.f32.mxu1 %vm691_vm5, %v663_v11 }
  0x4d   : > { %1033 = vmatprep.subr.bf16.mxu0 %v1032_v5  ;;  %v486_v14 = vadd.s32 %v483_v3, %v473_v7 }
  0x4e   : > { %1035 = vmatpush3.bf16.msra.mxu0 %v1032_v5 }
  0x4f   : > { %v499_v20 = vadd.s32 %v496_v9, %v486_v14 }
  0x51   : > { %v512_v23 = vadd.s32 %v509_v19, %v499_v20 }
  0x53   : > { %v525_v24 = vadd.s32 %v522_v8, %v512_v23 }
  0x55   : > { %v528_v25 = vcvt.s32.f32 %v525_v24 }
  0x57   : > { %999 = vmatprep.subr.msk.mxu0 %vm570_vm4, %v528_v25 }
  0x58   : > { %1000 = vmatpush3.msk.msra.mxu0 %vm570_vm4, %v528_v25 }
  0x59   : > { %1002 = vmatmul.mubr.msk.f32.vlgmr.msra.gmra.mrb[0].mxu0 %vm557_vm0, %v530_v26  ;;  %1044 = vmatprep.subr.bf16.mxu0 %v1160_v44 }
  0x5a   : > { %1004 = vmatprep.mubr.msk.f32.mxu0 %vm557_vm0, %v531_v27 }
  0x5d   : > { %1005 = vmatmul.mubr.msk.f32.gmra.mrb[2].mxu0 %vm557_vm0, %v532_v4  ;;  %vm1161_vm0 = vmmov 0  }
  0x5e   : > { %1029 = vmatprep.mubr.msk.f32.mxu0 %vm1161_vm0, %v1162_v45 }
  0x9e   : > { %v540_v28 = vpop.permute.xlu0 %539 }
  0x9f   : > { %v550_v29 = vpop.permute.xlu1 %549 }
  0xa2   : > { %v545_v30 = vpop.permute.xlu0 %544 }
  0xa3   : > { %v555_v34 = vpop.permute.xlu1 %554 }
  0xa6   : > { %v674_v47 = vpop.permute.xlu0 %673 }
  0xa7   : > { %v679_v46 = vpop.permute.xlu1 %678 }
  0xaa   : > { %v684_v53 = vpop.permute.xlu0 %683 }
  0xab   : > { %v689_v51 = vpop.permute.xlu1 %688 }
  0xae   : > { %v798_v60 = vpop.permute.xlu0 %797 }
 0x12c   : > { %v1003_v31 = vpop.f32.mrb[0].mxu0 }
 0x12d   : > { %v646_v32 = vadd.f32 %v1003_v31, %v545_v30  ;;  %v640_v12 = vpop.f32.mrb[1].mxu0 }
 0x12e   : > { %v641_v33 = vadd.f32 %v640_v12, %v540_v28 }
 0x12f   : > { %v660_v13 = vmax.f32 %v646_v32, 0.0 }
 0x130   : > { %v659_v15 = vmax.f32 %v641_v33, 0.0  ;;  %v1006_v35 = vpop.f32.mrb[2].mxu0 }
 0x131   : > { %v656_v36 = vadd.f32 %v1006_v35, %v555_v34  ;;  %v650_v37 = vpop.f32.mrb[3].mxu0 }
 0x132   : > { %v651_v38 = vadd.f32 %v650_v37, %v550_v29  ;;  %v1036_v39 = vpack.c.bf16 %v660_v13, %v659_v15 }
 0x133   : > { %v662_v40 = vmax.f32 %v656_v36, 0.0 }
 0x134   : > { %v661_v41 = vmax.f32 %v651_v38, 0.0  ;;  %1037 = vmatprep.subr.bf16.mxu1 %v1036_v39 }
 0x135   : > { %1039 = vmatpush3.bf16.msra.mxu1 %v1036_v39 }
 0x136   : > { %v1040_v16 = vpack.c.bf16 %v662_v40, %v661_v41 }
 0x138   : > { %1041 = vmatprep.subr.bf16.mxu1 %v1040_v16 }
 0x139   : > { %1043 = vmatpush3.bf16.msra.mxu1 %v1040_v16 }
 0x13c   : > { %1016 = vmatmul.mubr.msk.f32.vlgmr.msra.gmra.mrb[0].mxu1 %vm691_vm5, %v664_v17 }
 0x13d   : > { %1018 = vmatprep.mubr.msk.f32.mxu1 %vm691_vm5, %v665_v42 }
 0x140   : > { %1019 = vmatmul.mubr.msk.f32.gmra.mrb[2].mxu1 %vm691_vm5, %v666_v43 }
 0x20f   : > { %v1017_v48 = vpop.f32.mrb[0].mxu1 }
 0x210   : > { %v776_v49 = vadd.f32 %v1017_v48, %v679_v46  ;;  %v770_v18 = vpop.f32.mrb[1].mxu1 }
 0x211   : > { %v771_v50 = vadd.f32 %v770_v18, %v674_v47 }
 0x212   : > { %v790_v21 = vmax.f32 %v776_v49, 0.0 }
 0x213   : > { %v789_v22 = vmax.f32 %v771_v50, 0.0  ;;  %v1020_v52 = vpop.f32.mrb[2].mxu1 }
 0x214   : > { %v786_v54 = vadd.f32 %v1020_v52, %v689_v51  ;;  %v780_v55 = vpop.f32.mrb[3].mxu1 }
 0x215   : > { %v1045_v56 = vpack.c.bf16 %v790_v21, %v789_v22  ;;  %v781_v57 = vadd.f32 %v780_v55, %v684_v53 }
 0x216   : > { %v792_v6 = vmax.f32 %v786_v54, 0.0 }
 0x217   : > { %v791_v58 = vmax.f32 %v781_v57, 0.0  ;;  %1046 = vmatpush3.bf16.msra.mxu0 %v1045_v56 }
 0x218   : > { %1047 = vmatprep.subr.bf16.mxu0 %v1160_v44 }
 0x219   : > { %v1048_v10 = vpack.c.bf16 %v792_v6, %v791_v58 }
 0x21b   : > { %1049 = vmatpush3.bf16.msra.mxu0 %v1048_v10 }
 0x21e   : > { %1030 = vmatmul.mubr.msk.f32.vlgmr.msra.gmra.mrb[4].mxu0 %vm691_vm5, %v793_v59 }
 0x2f1   : > { %v869_v61 = vpop.f32.mrb[4].mxu0 }
 0x2f2   : > { %v870_v62 = vadd.f32 %v869_v61, %v798_v60  ;;  %v1031_v63 = vpop.f32.mrb[5].mxu0 }
 0x2f4   : > { %873 = vst [vmem:[%s314_s22] sm:$0xff] %v870_v62 }
 0x2f5   : > { %1108 = shalt.err (!%p1105_p5)
}
 0x2f6   : > { %s1109_s20 = scalar_lea.hbm %s1495_s9, 128  ;;  %s1113_s19 = scalar_lea.hbm %s1546_s7, 256 }
 0x2f7   : > { %p1110_p7 = scmp.ne.s32.totalorder %s1495_s9, %s1109_s20  ;;  %p1114_p12 = scmp.lt.u32.totalorder %s1495_s9, %s1546_s7 }
 0x2f8   : > { %p1115_p13 = scmp.lt.u32.totalorder %s1113_s19, %s1109_s20  ;;  %p1117_p1 = scmp.lt.u32.totalorder %s1109_s20, %s1495_s9 }
 0x2f9   : > { %p1111_p10 = pnand %p1110_p7, %p1242_p6 }
 0x2fa   : > { %p1116_p0 = por %p1115_p13, %p1114_p12 }
 0x2fb   : > { %p1112_p11 = pneg %p1111_p10 }
 0x2fc   : > { %p1118_p2 = por %p1117_p1, %p1116_p0 }
 0x2fe   : > { %p1119_p3 = pnand %p1118_p2, %p1112_p11 }
 0x300   : > { %1122 = shalt.err (!%p1119_p3)
}
 0x301   : > { %1050 = dma.vmem_to_hbm [thread:$0]  (%p1242_p6), %s1497_s23, 128, %s1495_s9, %s875_s13  }
 0x302 PF: > { %s900_s29 = sand.u32 1, %s1145_s24   ;;  %p1053_p4 = pnand %p955_p9, %p1246_p8 }
 0x303   : > { %s901_s8 = scalar_lea.sflag [#allocation4], %s900_s29 }
 0x304   : > { %1140 = dma.done.wait (!%p1053_p4), %s901_s8, 128  }
 0x305   : > { %1142 = vsyncadd (!%p1053_p4), %s901_s8, 4294967168  ;;  %p17_p5 = scmp.ge.s32.totalorder %s1227_s30, 4   ;;  %s1549_s24 = smov %s1149_s25 }
 0x306   : > { %s1550_s25 = smov %s1153_s26  ;;  %s1551_s26 = smov %s1240_s10 }
 0x307   : > { %s1552_s27 = smov %s1227_s30  ;;  %19 = sbr.rel (!%p17_p5) target bundleno = 3 (0x3), region = 126 }
 0x30e   :  { %906 = vsyncpa [#allocation4], 1 }
 0x30f   :  { %908 = vsyncpa [#allocation4 + $0x1], 1 }

</bundles_post_ra>
